<compile_context>
chip_gen: v6e
topology: v6e:2x2x1
jax: 0.10.0
libtpu: 0.0.40
codegen_flags: <defaults>
</compile_context>

<pallas_src>
import functools

import jax
import jax.numpy as jnp
from jax.experimental import pallas as pl
from jax.experimental.pallas import tpu as pltpu


def _round_up(x, m):
    return ((x + m - 1) // m) * m


def _clamp(k, lo, hi):
    return jnp.maximum(jnp.minimum(k, hi), lo)


def _vmem_plan():
    """(vmem_limit_bytes, resident-ZW budget) tuned per TPU generation.

    v5e/v6e: 128 MiB physical VMEM -> generous limit + large resident ZW.
    v7x (64 MiB physical) or unknown: conservative limit, small residency.
    """
    try:
        phys = pltpu.get_tpu_info().vmem_capacity_bytes
    except Exception:
        phys = 0
    if phys >= 100 * 1024 * 1024:            # v5e / v6e
        return 96 * 1024 * 1024, 48 * 1024 * 1024
    return 48 * 1024 * 1024, 16 * 1024 * 1024  # v7x / unknown


_VMEM_LIMIT_BYTES, _RESIDENT_ZW_BUDGET = _vmem_plan()


# ---------------------------------------------------------------------------
# Kernel 1: feature transform  ZW = Z @ W   (large row tiles; W resident)
# ---------------------------------------------------------------------------
def _feature_kernel(z_ref, w_ref, out_ref):
    out_ref[...] = jnp.dot(
        z_ref[...], w_ref[...], preferred_element_type=jnp.float32
    ).astype(out_ref.dtype)


def feature_transform(z, w, *, tm):
    n_pad, f_pad = z.shape
    h_pad = w.shape[1]
    return pl.pallas_call(
        _feature_kernel,
        out_shape=jax.ShapeDtypeStruct((n_pad, h_pad), jnp.bfloat16),
        grid_spec=pltpu.PrefetchScalarGridSpec(
            num_scalar_prefetch=0,
            grid=(n_pad // tm,),
            in_specs=[
                pl.BlockSpec((tm, f_pad), lambda i: (i, 0)),     # Z rows (bf16)
                pl.BlockSpec((f_pad, h_pad), lambda i: (0, 0)),  # W resident
            ],
            out_specs=pl.BlockSpec((tm, h_pad), lambda i: (i, 0)),
        ),
        compiler_params=pltpu.CompilerParams(
            dimension_semantics=("parallel",),
            vmem_limit_bytes=_VMEM_LIMIT_BYTES,
        ),
    )(z, w)


# ---------------------------------------------------------------------------
# Kernel 2: H = A_hat @ ZW (+bias folded in init) ; Z = PReLU(H) ;
#           fused partial global_add_pool.  Grid = (row tiles, k reduction).
# ---------------------------------------------------------------------------
def _aggregate_kernel(kmin_ref, kmax_ref, a_ref, zw_ref, p_ref, b_ref,
                      alpha_ref, z_ref, pool_ref, acc_ref, *,
                      zw_resident, tk):
    i = pl.program_id(0)
    k = pl.program_id(1)

    @pl.when(k == 0)
    def _():
        # Bias folded into the accumulator init (saves an epilogue VPU add).
        acc_ref[...] = jnp.broadcast_to(b_ref[...], acc_ref.shape)

    # Skip column blocks that are structurally zero for this row tile
    # (block-diagonal A_hat of batched disjoint graphs).  The index_maps are
    # clamped to the same range, so skipped steps also issue no DMA.
    @pl.when(jnp.logical_and(k >= kmin_ref[i], k <= kmax_ref[i]))
    def _():
        if zw_resident:
            zw_blk = zw_ref[pl.ds(pl.multiple_of(k * tk, tk), tk), :]
        else:
            zw_blk = zw_ref[...]
        acc_ref[...] += jnp.dot(
            a_ref[...], zw_blk, preferred_element_type=jnp.float32
        )

    @pl.when(k == pl.num_programs(1) - 1)
    def _():
        h = acc_ref[...]                               # bias already included
        z = jnp.where(h > 0, h, alpha_ref[...] * h)    # per-channel PReLU (f32)
        z_bf = z.astype(z_ref.dtype)
        z_ref[...] = z_bf
        # Fused global_add_pool partial for this row tile: bf16 x bf16 -> f32
        # on the same activation that is propagated to the next layer.
        pool_ref[0] = jnp.dot(p_ref[...], z_bf,
                              preferred_element_type=jnp.float32)


def gcn_aggregate(a_hat, zw, pool_mat, b, alpha, kmin, kmax, *, tm, tk):
    n_pad = a_hat.shape[0]
    h_pad = zw.shape[1]
    g_pad = pool_mat.shape[0]
    num_row_tiles = n_pad // tm
    num_k_blocks = n_pad // tk

    # Resident ZW removes its re-stream across row tiles; budget accounts for
    # possible double buffering of the (invariant) block.
    zw_resident = 2 * n_pad * h_pad * 2 <= _RESIDENT_ZW_BUDGET
    if zw_resident:
        zw_spec = pl.BlockSpec((n_pad, h_pad), lambda i, k, kmin, kmax: (0, 0))
    else:
        zw_spec = pl.BlockSpec(
            (tk, h_pad),
            lambda i, k, kmin, kmax: (_clamp(k, kmin[i], kmax[i]), 0),
            pipeline_mode=pl.Buffered(3),   # deeper buffering on the stream
        )

    a_spec = pl.BlockSpec(
        (tm, tk), lambda i, k, kmin, kmax: (i, _clamp(k, kmin[i], kmax[i])))

    kernel = functools.partial(_aggregate_kernel, zw_resident=zw_resident, tk=tk)

    z_out, pool_part = pl.pallas_call(
        kernel,
        out_shape=[
            jax.ShapeDtypeStruct((n_pad, h_pad), jnp.bfloat16),
            jax.ShapeDtypeStruct((num_row_tiles, g_pad, h_pad), jnp.float32),
        ],
        grid_spec=pltpu.PrefetchScalarGridSpec(
            num_scalar_prefetch=2,
            grid=(num_row_tiles, num_k_blocks),
            in_specs=[
                a_spec,                                               # A_hat bf16
                zw_spec,                                              # ZW bf16
                pl.BlockSpec((g_pad, tm), lambda i, k, kmin, kmax: (0, i)),
                pl.BlockSpec((1, h_pad), lambda i, k, kmin, kmax: (0, 0)),
                pl.BlockSpec((1, h_pad), lambda i, k, kmin, kmax: (0, 0)),
            ],
            out_specs=[
                pl.BlockSpec((tm, h_pad), lambda i, k, kmin, kmax: (i, 0)),
                pl.BlockSpec((1, g_pad, h_pad),
                             lambda i, k, kmin, kmax: (i, 0, 0)),
            ],
            scratch_shapes=[pltpu.VMEM((tm, h_pad), jnp.float32)],
        ),
        compiler_params=pltpu.CompilerParams(
            dimension_semantics=("parallel", "arbitrary"),
            vmem_limit_bytes=_VMEM_LIMIT_BYTES,
        ),
    )(kmin, kmax, a_hat, zw, pool_mat, b, alpha)
    return z_out, pool_part


# ---------------------------------------------------------------------------
# Tiling plan
# ---------------------------------------------------------------------------
def _plan_tiles(n, hidden):
    h_pad = _round_up(hidden, 128)
    # j axis collapsed: tn == h_pad so A_hat streams exactly once.
    # TODO(synk): re-introduce a j axis for very large hidden (h_pad > ~2048)
    # to bound the f32 accumulator tile.
    tm = 512
    if n <= tm:
        n_pad = max(256, _round_up(n, 256))
        tm = n_pad
    else:
        # Even number of row tiles so the two v7x TensorCores split evenly.
        n_pad = _round_up(n, 2 * tm)
    tk = min(n_pad, 2048 if h_pad <= 1024 else 1024)
    while n_pad % tk:
        tk //= 2
    return n_pad, h_pad, tm, tk


def _feature_row_tile(n_pad, f_pad, h_pad):
    tm = min(n_pad, 2048)
    while tm > 256 and (n_pad % tm != 0
                        or 4 * tm * (f_pad + h_pad) > 24 * 1024 * 1024):
        tm //= 2
    while n_pad % tm:
        tm //= 2
    return tm


# ---------------------------------------------------------------------------
# Glue (plain JAX): adjacency normalization, padding, per-layer loop
# ---------------------------------------------------------------------------
def gcn_norm_dense(edge_index, num_nodes):
    """Dense D^-1/2 (A + I) D^-1/2 from a COO edge_index [2, E].

    Matches PyG gcn_norm semantics: duplicate edges accumulate, and self-loops
    are only added for nodes that do not already have one
    (add_remaining_self_loops)."""
    src, dst = edge_index[0], edge_index[1]
    a = jnp.zeros((num_nodes, num_nodes), jnp.float32)
    a = a.at[dst, src].add(1.0)
    diag = jnp.diagonal(a)
    a = a + jnp.diag(jnp.where(diag > 0, 0.0, 1.0))
    deg = a.sum(axis=1)
    dinv = jnp.where(deg > 0, deg ** -0.5, 0.0)
    return dinv[:, None] * a * dinv[None, :]


def _graph_block_bounds(batch, n, n_pad, tm, tk):
    """Per-row-tile inclusive [kmin, kmax] range of nonzero A_hat column blocks.

    Assumes nodes are grouped by graph (sorted `batch`) and edges are
    intra-graph, as produced by PyG's Batch/DataLoader.  Padded rows of A_hat
    are all-zero, so any in-range value is safe for them."""
    num_row_tiles = n_pad // tm
    idx = jnp.arange(num_row_tiles) * tm
    row_lo = jnp.minimum(idx, n - 1)
    row_hi = jnp.minimum(idx + tm - 1, n - 1)
    g_lo = batch[row_lo]
    g_hi = batch[row_hi]
    col_lo = jnp.searchsorted(batch, g_lo, side="left")
    col_hi = jnp.searchsorted(batch, g_hi, side="right")   # exclusive
    kmin = (col_lo // tk).astype(jnp.int32)
    kmax = ((col_hi - 1) // tk).astype(jnp.int32)
    return kmin, kmax


def init_gconv_params(key, input_dim, hidden_dim, num_layers):
    """GCNConv weight (glorot), zero bias, PReLU alpha = 0.25 (PyTorch default)."""
    params = []
    for i in range(num_layers):
        key, wk = jax.random.split(key)
        fan_in = input_dim if i == 0 else hidden_dim
        limit = (6.0 / (fan_in + hidden_dim)) ** 0.5
        w = jax.random.uniform(wk, (fan_in, hidden_dim), jnp.float32, -limit, limit)
        b = jnp.zeros((hidden_dim,), jnp.float32)
        alpha = jnp.full((hidden_dim,), 0.25, jnp.float32)
        params.append((w, b, alpha))
    return params


@functools.partial(jax.jit, static_argnames=("num_graphs",))
def gconv_forward(params, x, edge_index, batch, *, num_graphs):
    n, input_dim = x.shape
    hidden = params[0][0].shape[1]

    n_pad, h_pad, tm, tk = _plan_tiles(n, hidden)
    g_pad = _round_up(num_graphs, 8)

    # Dense normalized adjacency (zero pad rows/cols are inert), bf16 for MXU.
    a_hat = gcn_norm_dense(edge_index, n)
    a_pad = jnp.zeros((n_pad, n_pad), jnp.float32).at[:n, :n].set(a_hat)
    a_pad = a_pad.astype(jnp.bfloat16)

    # One-hot pool matrix (bf16 is exact for 0/1); padded columns are zero so
    # padded node rows never contribute to the pooled sums.
    pool = (batch[None, :] == jnp.arange(num_graphs)[:, None]).astype(jnp.bfloat16)
    pool_pad = jnp.zeros((g_pad, n_pad), jnp.bfloat16).at[:num_graphs, :n].set(pool)

    # Block-diagonal sparsity bounds for the aggregation reduction.
    kmin, kmax = _graph_block_bounds(batch, n, n_pad, tm, tk)

    # Node features, padded + bf16.  NOTE: padded rows end up with
    # z = PReLU(bias) != 0; they are masked by the zero A_hat / pool columns
    # and sliced off at the end — do not consume z without slicing [:n].
    f_pad0 = _round_up(input_dim, 128)
    z = jnp.zeros((n_pad, f_pad0), jnp.float32).at[:n, :input_dim].set(
        x.astype(jnp.float32)).astype(jnp.bfloat16)

    gs = []
    for li, (w, b, alpha) in enumerate(params):
        fan_in = w.shape[0]
        f_pad = f_pad0 if li == 0 else h_pad
        w_pad = jnp.zeros((f_pad, h_pad), jnp.float32).at[:fan_in, :hidden].set(
            w).astype(jnp.bfloat16)
        b_pad = jnp.zeros((1, h_pad), jnp.float32).at[0, :hidden].set(b)
        alpha_pad = jnp.zeros((1, h_pad), jnp.float32).at[0, :hidden].set(alpha)

        tm_feat = _feature_row_tile(n_pad, f_pad, h_pad)
        zw = feature_transform(z, w_pad, tm=tm_feat)          # [n_pad, h_pad] bf16
        z, pool_part = gcn_aggregate(a_pad, zw, pool_pad, b_pad, alpha_pad,
                                     kmin, kmax, tm=tm, tk=tk)
        # Tiny cross-row-tile reduction of the fused pool partials (XLA).
        gs.append(pool_part.sum(axis=0)[:num_graphs, :hidden])

    z_out = z[:n, :hidden].astype(jnp.float32)
    g = jnp.concatenate(gs, axis=1)
    return z_out, g


# ---------------------------------------------------------------------------
if __name__ == "__main__":
    key = jax.random.PRNGKey(0)
    N, input_dim, hidden_dim, num_layers, num_graphs = 16, 8, 32, 2, 2

    kx, ke, kp = jax.random.split(key, 3)
    x = jax.random.normal(kx, (N, input_dim), jnp.float32)

    # Two graphs of 8 nodes each; random intra-graph edges, symmetrized.
    src = jax.random.randint(ke, (24,), 0, 8, dtype=jnp.int32)
    dst = jax.random.randint(jax.random.fold_in(ke, 1), (24,), 0, 8, dtype=jnp.int32)
    offs = jnp.concatenate(
        [jnp.zeros(12, jnp.int32), jnp.full((12,), 8, jnp.int32)]
    )
    src = src + offs
    dst = dst + offs
    edge_index = jnp.stack(
        [jnp.concatenate([src, dst]), jnp.concatenate([dst, src])]
    )  # [2, 48]
    batch = jnp.concatenate([jnp.zeros(8, jnp.int32), jnp.ones(8, jnp.int32)])

    params = init_gconv_params(kp, input_dim, hidden_dim, num_layers)

    z, g = gconv_forward(params, x, edge_index, batch, num_graphs=num_graphs)
    jax.block_until_ready((z, g))

    assert z.shape == (N, hidden_dim)
    assert g.shape == (num_graphs, hidden_dim * num_layers)

    # Pure-JAX f32 reference; loose tolerance because the kernels feed the MXU
    # with bf16 inputs (f32 accumulation).
    a_ref = gcn_norm_dense(edge_index, N)
    pool_ref = (batch[None, :] == jnp.arange(num_graphs)[:, None]).astype(jnp.float32)
    z_ref = x.astype(jnp.float32)
    gs_ref = []
    for (w, b, alpha) in params:
        h = a_ref @ (z_ref @ w) + b[None, :]
        z_ref = jnp.where(h > 0, h, alpha[None, :] * h)
        gs_ref.append(pool_ref @ z_ref)
    g_ref = jnp.concatenate(gs_ref, axis=1)

    z_err = float(jnp.max(jnp.abs(z - z_ref)))
    g_err = float(jnp.max(jnp.abs(g - g_ref)))
    assert z_err < 0.2, f"z mismatch: {z_err}"
    assert g_err < 0.8, f"g mismatch: {g_err}"
    print("KERNEL_OK")
</pallas_src>

<mosaic_0001>
module attributes {stable_mosaic.version = 11 : i64} {
  func.func private @main(%arg0: i32) attributes {dimension_semantics = [#tpu.dimension_semantics<core_parallel>], iteration_bounds = array<i64: 2>, tpu.core_type = #tpu.core_type<sc_scalar_subcore>, window_params = []} {
    return
  }
}

module attributes {stable_mosaic.version = 11 : i64} {
  func.func private @main(%arg0: i32) attributes {dimension_semantics = [#tpu.dimension_semantics<core_parallel>], iteration_bounds = array<i64: 2>, tpu.core_type = #tpu.core_type<sc_scalar_subcore>, window_params = []} {
    return
  }
}

module attributes {stable_mosaic.version = 11 : i64} {
  func.func @_feature_kernel(%arg0: i32, %arg1: memref<256x128xbf16, #tpu.memory_space<vmem>>, %arg2: memref<128x128xbf16, #tpu.memory_space<vmem>>, %arg3: memref<256x128xbf16, #tpu.memory_space<vmem>>) attributes {dimension_semantics = [#tpu.dimension_semantics<parallel>], iteration_bounds = array<i64: 1>, scalar_prefetch = 0 : i64, scratch_operands = 0 : i64, tpu.core_type = #tpu.core_type<tc>, window_params = [{transform_indices = @transform_0, window_bounds = array<i64: 256, 128>}, {pipeline_mode = #tpu.pipeline_mode<synchronous>, transform_indices = @transform_1, window_bounds = array<i64: 128, 128>}, {transform_indices = @transform_2, window_bounds = array<i64: 256, 128>}]} {
    %c0 = arith.constant 0 : index
    %c0_0 = arith.constant 0 : index
    %0 = vector.load %arg1[%c0, %c0_0] : memref<256x128xbf16, #tpu.memory_space<vmem>>, vector<256x128xbf16>
    %c0_1 = arith.constant 0 : index
    %c0_2 = arith.constant 0 : index
    %1 = vector.load %arg2[%c0_1, %c0_2] : memref<128x128xbf16, #tpu.memory_space<vmem>>, vector<128x128xbf16>
    %cst = arith.constant dense<0.000000e+00> : vector<256x128xf32>
    %2 = tpu.matmul %0, %1, %cst {dimension_numbers = #tpu.dot_dimension_numbers<[1], [0], [0], [1], [0, 0, 1, 1], [], []>} : vector<256x128xbf16>, vector<128x128xbf16>, vector<256x128xf32> -> vector<256x128xf32>
    %3 = arith.truncf %2 : vector<256x128xf32> to vector<256x128xbf16>
    %c0_3 = arith.constant 0 : index
    %c0_4 = arith.constant 0 : index
    %4 = vector.load %arg3[%c0_3, %c0_4] : memref<256x128xbf16, #tpu.memory_space<vmem>>, vector<256x128xbf16>
    tpu.vector_store %arg3[%c0_3, %c0_4], %3 {strides = array<i32>} : memref<256x128xbf16, #tpu.memory_space<vmem>>, vector<256x128xbf16>,
    return
  }
  func.func @transform_0(%arg0: i32) -> (i32, i32) {
    %c0_i32 = arith.constant 0 : i32
    %c0_i32_0 = arith.constant 0 : i32
    return %arg0, %c0_i32 : i32, i32
  }
  func.func @transform_1(%arg0: i32) -> (i32, i32) {
    %c0_i32 = arith.constant 0 : i32
    %c0_i32_0 = arith.constant 0 : i32
    %c0_i32_1 = arith.constant 0 : i32
    return %c0_i32, %c0_i32_0 : i32, i32
  }
  func.func @transform_2(%arg0: i32) -> (i32, i32) {
    %c0_i32 = arith.constant 0 : i32
    %c0_i32_0 = arith.constant 0 : i32
    return %arg0, %c0_i32 : i32, i32
  }
}

module attributes {stable_mosaic.version = 11 : i64} {
  func.func @_aggregate_kernel(%arg0: i32, %arg1: i32, %arg2: memref<1xi32, #tpu.memory_space<smem>>, %arg3: memref<1xi32, #tpu.memory_space<smem>>, %arg4: memref<256x256xbf16, #tpu.memory_space<vmem>>, %arg5: memref<256x128xbf16, #tpu.memory_space<vmem>>, %arg6: memref<8x256xbf16, #tpu.memory_space<vmem>>, %arg7: memref<1x128xf32, #tpu.memory_space<vmem>>, %arg8: memref<1x128xf32, #tpu.memory_space<vmem>>, %arg9: memref<256x128xbf16, #tpu.memory_space<vmem>>, %arg10: memref<1x8x128xf32, #tpu.memory_space<vmem>>, %arg11: memref<256x128xf32, #tpu.memory_space<vmem>>) attributes {dimension_semantics = [#tpu.dimension_semantics<parallel>, #tpu.dimension_semantics<arbitrary>], iteration_bounds = array<i64: 1, 1>, scalar_prefetch = 2 : i64, scratch_operands = 1 : i64, tpu.core_type = #tpu.core_type<tc>, window_params = [{transform_indices = @transform_0, window_bounds = array<i64: 256, 256>}, {pipeline_mode = #tpu.pipeline_mode<synchronous>, transform_indices = @transform_1, window_bounds = array<i64: 256, 128>}, {transform_indices = @transform_2, window_bounds = array<i64: 8, 256>}, {pipeline_mode = #tpu.pipeline_mode<synchronous>, transform_indices = @transform_3, window_bounds = array<i64: 1, 128>}, {pipeline_mode = #tpu.pipeline_mode<synchronous>, transform_indices = @transform_4, window_bounds = array<i64: 1, 128>}, {transform_indices = @transform_5, window_bounds = array<i64: 256, 128>}, {transform_indices = @transform_6, window_bounds = array<i64: 1, 8, 128>}]} {
    %c0_i32 = arith.constant 0 : i32
    %0 = arith.cmpi eq, %arg1, %c0_i32 : i32
    %1 = arith.extui %0 : i1 to i32
    %c0_i32_0 = arith.constant 0 : i32
    %2 = arith.cmpi ne, %1, %c0_i32_0 : i32
    scf.if %2 {
      %c0 = arith.constant 0 : index
      %c0_4 = arith.constant 0 : index
      %15 = vector.load %arg7[%c0, %c0_4] : memref<1x128xf32, #tpu.memory_space<vmem>>, vector<1x128xf32>
      %16 = vector.shape_cast %15 : vector<1x128xf32> to vector<1x128xf32>
      %17 = vector.broadcast %16 : vector<1x128xf32> to vector<256x128xf32>
      %c0_5 = arith.constant 0 : index
      %c0_6 = arith.constant 0 : index
      %18 = vector.load %arg11[%c0_5, %c0_6] : memref<256x128xf32, #tpu.memory_space<vmem>>, vector<256x128xf32>
      tpu.vector_store %arg11[%c0_5, %c0_6], %17 {strides = array<i32>} : memref<256x128xf32, #tpu.memory_space<vmem>>, vector<256x128xf32>,
    } else {
    }
    %3 = arith.index_cast %arg0 : i32 to index
    %4 = memref.load %arg2[%3] : memref<1xi32, #tpu.memory_space<smem>>
    %5 = arith.cmpi sge, %arg1, %4 : i32
    %6 = arith.index_cast %arg0 : i32 to index
    %7 = memref.load %arg3[%6] : memref<1xi32, #tpu.memory_space<smem>>
    %8 = arith.cmpi sle, %arg1, %7 : i32
    %9 = arith.andi %5, %8 : i1
    %10 = arith.extui %9 : i1 to i32
    %c0_i32_1 = arith.constant 0 : i32
    %11 = arith.cmpi ne, %10, %c0_i32_1 : i32
    scf.if %11 {
      %c256_i32 = arith.constant 256 : i32
      %15 = arith.muli %arg1, %c256_i32 : i32
      %16 = tpu.assume_multiple %15, 256 : i32
      %17 = arith.index_cast %16 : i32 to index
      %c0 = arith.constant 0 : index
      %18 = vector.load %arg5[%17, %c0] : memref<256x128xbf16, #tpu.memory_space<vmem>>, vector<256x128xbf16>
      %c0_4 = arith.constant 0 : index
      %c0_5 = arith.constant 0 : index
      %19 = vector.load %arg11[%c0_4, %c0_5] : memref<256x128xf32, #tpu.memory_space<vmem>>, vector<256x128xf32>
      %c0_6 = arith.constant 0 : index
      %c0_7 = arith.constant 0 : index
      %20 = vector.load %arg4[%c0_6, %c0_7] : memref<256x256xbf16, #tpu.memory_space<vmem>>, vector<256x256xbf16>
      %cst = arith.constant dense<0.000000e+00> : vector<256x128xf32>
      %21 = tpu.matmul %20, %18, %cst {dimension_numbers = #tpu.dot_dimension_numbers<[1], [0], [0], [1], [0, 0, 1, 1], [], []>} : vector<256x256xbf16>, vector<256x128xbf16>, vector<256x128xf32> -> vector<256x128xf32>
      %22 = arith.addf %19, %21 : vector<256x128xf32>
      %c0_8 = arith.constant 0 : index
      %c0_9 = arith.constant 0 : index
      %23 = vector.load %arg11[%c0_8, %c0_9] : memref<256x128xf32, #tpu.memory_space<vmem>>, vector<256x128xf32>
      tpu.vector_store %arg11[%c0_8, %c0_9], %22 {strides = array<i32>} : memref<256x128xf32, #tpu.memory_space<vmem>>, vector<256x128xf32>,
    } else {
    }
    %c0_i32_2 = arith.constant 0 : i32
    %12 = arith.cmpi eq, %arg1, %c0_i32_2 : i32
    %13 = arith.extui %12 : i1 to i32
    %c0_i32_3 = arith.constant 0 : i32
    %14 = arith.cmpi ne, %13, %c0_i32_3 : i32
    scf.if %14 {
      %c0 = arith.constant 0 : index
      %c0_4 = arith.constant 0 : index
      %15 = vector.load %arg11[%c0, %c0_4] : memref<256x128xf32, #tpu.memory_space<vmem>>, vector<256x128xf32>
      %cst = arith.constant 0.000000e+00 : f32
      %16 = vector.broadcast %cst : f32 to vector<256x128xf32>
      %17 = arith.cmpf ogt, %15, %16 : vector<256x128xf32>
      %c0_5 = arith.constant 0 : index
      %c0_6 = arith.constant 0 : index
      %18 = vector.load %arg8[%c0_5, %c0_6] : memref<1x128xf32, #tpu.memory_space<vmem>>, vector<1x128xf32>
      %19 = vector.broadcast %18 : vector<1x128xf32> to vector<256x128xf32>
      %20 = arith.mulf %19, %15 : vector<256x128xf32>
      %21 = arith.select %17, %15, %20 : vector<256x128xi1>, vector<256x128xf32>
      %22 = arith.truncf %21 : vector<256x128xf32> to vector<256x128xbf16>
      %c0_7 = arith.constant 0 : index
      %c0_8 = arith.constant 0 : index
      %23 = vector.load %arg9[%c0_7, %c0_8] : memref<256x128xbf16, #tpu.memory_space<vmem>>, vector<256x128xbf16>
      tpu.vector_store %arg9[%c0_7, %c0_8], %22 {strides = array<i32>} : memref<256x128xbf16, #tpu.memory_space<vmem>>, vector<256x128xbf16>,
      %c0_9 = arith.constant 0 : index
      %c0_10 = arith.constant 0 : index
      %24 = vector.load %arg6[%c0_9, %c0_10] : memref<8x256xbf16, #tpu.memory_space<vmem>>, vector<8x256xbf16>
      %cst_11 = arith.constant dense<0.000000e+00> : vector<8x128xf32>
      %25 = tpu.matmul %24, %22, %cst_11 {dimension_numbers = #tpu.dot_dimension_numbers<[1], [0], [0], [1], [0, 0, 1, 1], [], []>} : vector<8x256xbf16>, vector<256x128xbf16>, vector<8x128xf32> -> vector<8x128xf32>
      %c0_12 = arith.constant 0 : index
      %c0_13 = arith.constant 0 : index
      %c0_14 = arith.constant 0 : index
      %26 = vector.load %arg10[%c0_12, %c0_13, %c0_14] : memref<1x8x128xf32, #tpu.memory_space<vmem>>, vector<1x8x128xf32>
      %27 = vector.shape_cast %26 : vector<1x8x128xf32> to vector<8x128xf32>
      %28 = vector.shape_cast %25 : vector<8x128xf32> to vector<1x8x128xf32>
      tpu.vector_store %arg10[%c0_12, %c0_13, %c0_14], %28 {strides = array<i32>} : memref<1x8x128xf32, #tpu.memory_space<vmem>>, vector<1x8x128xf32>,
    } else {
    }
    return
  }
  func.func @transform_0(%arg0: i32, %arg1: i32, %arg2: memref<1xi32, #tpu.memory_space<smem>>, %arg3: memref<1xi32, #tpu.memory_space<smem>>) -> (i32, i32) {
    %0 = arith.index_cast %arg0 : i32 to index
    %1 = memref.load %arg2[%0] : memref<1xi32, #tpu.memory_space<smem>>
    %2 = arith.index_cast %arg0 : i32 to index
    %3 = memref.load %arg3[%2] : memref<1xi32, #tpu.memory_space<smem>>
    %4 = arith.minsi %arg1, %3 : i32
    %5 = arith.maxsi %4, %1 : i32
    %c0_i32 = arith.constant 0 : i32
    return %arg0, %5 : i32, i32
  }
  func.func @transform_1(%arg0: i32, %arg1: i32, %arg2: memref<1xi32, #tpu.memory_space<smem>>, %arg3: memref<1xi32, #tpu.memory_space<smem>>) -> (i32, i32) {
    %c0_i32 = arith.constant 0 : i32
    %c0_i32_0 = arith.constant 0 : i32
    %c0_i32_1 = arith.constant 0 : i32
    return %c0_i32, %c0_i32_0 : i32, i32
  }
  func.func @transform_2(%arg0: i32, %arg1: i32, %arg2: memref<1xi32, #tpu.memory_space<smem>>, %arg3: memref<1xi32, #tpu.memory_space<smem>>) -> (i32, i32) {
    %c0_i32 = arith.constant 0 : i32
    %c0_i32_0 = arith.constant 0 : i32
    return %c0_i32, %arg0 : i32, i32
  }
  func.func @transform_3(%arg0: i32, %arg1: i32, %arg2: memref<1xi32, #tpu.memory_space<smem>>, %arg3: memref<1xi32, #tpu.memory_space<smem>>) -> (i32, i32) {
    %c0_i32 = arith.constant 0 : i32
    %c0_i32_0 = arith.constant 0 : i32
    %c0_i32_1 = arith.constant 0 : i32
    return %c0_i32, %c0_i32_0 : i32, i32
  }
  func.func @transform_4(%arg0: i32, %arg1: i32, %arg2: memref<1xi32, #tpu.memory_space<smem>>, %arg3: memref<1xi32, #tpu.memory_space<smem>>) -> (i32, i32) {
    %c0_i32 = arith.constant 0 : i32
    %c0_i32_0 = arith.constant 0 : i32
    %c0_i32_1 = arith.constant 0 : i32
    return %c0_i32, %c0_i32_0 : i32, i32
  }
  func.func @transform_5(%arg0: i32, %arg1: i32, %arg2: memref<1xi32, #tpu.memory_space<smem>>, %arg3: memref<1xi32, #tpu.memory_space<smem>>) -> (i32, i32) {
    %c0_i32 = arith.constant 0 : i32
    %c0_i32_0 = arith.constant 0 : i32
    return %arg0, %c0_i32 : i32, i32
  }
  func.func @transform_6(%arg0: i32, %arg1: i32, %arg2: memref<1xi32, #tpu.memory_space<smem>>, %arg3: memref<1xi32, #tpu.memory_space<smem>>) -> (i32, i32, i32) {
    %c0_i32 = arith.constant 0 : i32
    %c0_i32_0 = arith.constant 0 : i32
    %c0_i32_1 = arith.constant 0 : i32
    return %arg0, %c0_i32, %c0_i32_0 : i32, i32, i32
  }
}

</mosaic_0001>

<bundles_post_ra>
// kernel: gconv_forward.4
= control target key start
LH: loop header
LB: loop body
LE: loop exit
PB: predicated region body
PF: predicated region fallthrough
CT: control target
= control target key end

     0   :  { %s959_s1 = inlined_call_operand.vmem [shape: bf16[128,128], index: 1, kind: input, shape index: {}]   ;;  %s960_s0 = inlined_call_operand.vmem [shape: bf16[256,128], index: 0, kind: input, shape index: {}]   ;;  %s961_s2 = inlined_call_operand.vmem [shape: bf16[256,128], index: 2, kind: output, shape index: {}]  }
   0x1   :  { %v800_v0 = vld [vmem:[%s959_s1 + $0x38] sm:$0xff]   ;;  %v801_v1 = vld [vmem:[%s959_s1 + $0x30] sm:$0xff]   ;;  %v802_v2 = vld [vmem:[%s959_s1 + $0x28] sm:$0xff]  }
   0x2   :  { %736 = vmatprep.subr.bf16.mxu0 %v800_v0  ;;  %784 = vmatprep.subr.bf16.mxu1 %v800_v0  ;;  %v803_v3 = vld [vmem:[%s959_s1 + $0x20] sm:$0xff]   ;;  %v804_v6 = vld [vmem:[%s959_s1 + $0x18] sm:$0xff]   ;;  %v805_v7 = vld [vmem:[%s959_s1 + $0x10] sm:$0xff]  }
   0x3   :  { %737 = vmatpush3.bf16.msra.mxu0 %v800_v0  ;;  %792 = vmatpush3.bf16.msra.mxu1 %v800_v0  ;;  %v808_v4 = vld [vmem:[%s960_s0] sm:$0xff]   ;;  %v806_v8 = vld [vmem:[%s959_s1 + $0x8] sm:$0xff]   ;;  %v812_v12 = vld [vmem:[%s960_s0 + $0x10] sm:$0xff]  }
   0x4   :  { %738 = vmatprep.subr.bf16.mxu0 %v801_v1  ;;  %785 = vmatprep.subr.bf16.mxu1 %v801_v1  ;;  %v809_v5 = vld [vmem:[%s960_s0 + $0x40] sm:$0xff]   ;;  %v810_v10 = vld [vmem:[%s960_s0 + $0x8] sm:$0xff]   ;;  %v813_v13 = vld [vmem:[%s960_s0 + $0x50] sm:$0xff]  }
   0x5   :  { %752 = vmatprep.mubr.bf16.mxu0 %v808_v4  ;;  %768 = vmatprep.mubr.bf16.mxu1 %v809_v5  ;;  %v807_v9 = vld [vmem:[%s959_s1] sm:$0xff]   ;;  %v811_v11 = vld [vmem:[%s960_s0 + $0x48] sm:$0xff]   ;;  %v814_v14 = vld [vmem:[%s960_s0 + $0x18] sm:$0xff]  }
   0x6   :  { %v815_v15 = vld [vmem:[%s960_s0 + $0x58] sm:$0xff]   ;;  %v816_v16 = vld [vmem:[%s960_s0 + $0x20] sm:$0xff]   ;;  %v818_v18 = vld [vmem:[%s960_s0 + $0x28] sm:$0xff]  }
   0x7   :  { %739 = vmatpush3.bf16.msra.mxu0 %v801_v1  ;;  %793 = vmatpush3.bf16.msra.mxu1 %v801_v1  ;;  %v817_v17 = vld [vmem:[%s960_s0 + $0x60] sm:$0xff]   ;;  %v819_v19 = vld [vmem:[%s960_s0 + $0x68] sm:$0xff]   ;;  %v820_v20 = vld [vmem:[%s960_s0 + $0x30] sm:$0xff]  }
   0x8   :  { %740 = vmatprep.subr.bf16.mxu0 %v802_v2  ;;  %786 = vmatprep.subr.bf16.mxu1 %v802_v2  ;;  %v821_v21 = vld [vmem:[%s960_s0 + $0x70] sm:$0xff]   ;;  %v822_v22 = vld [vmem:[%s960_s0 + $0x38] sm:$0xff]  }
   0x9   :  { %v823_v23 = vld [vmem:[%s960_s0 + $0x78] sm:$0xff]  }
   0xb   :  { %741 = vmatpush3.bf16.msra.mxu0 %v802_v2  ;;  %794 = vmatpush3.bf16.msra.mxu1 %v802_v2 }
   0xc   :  { %742 = vmatprep.subr.bf16.mxu0 %v803_v3  ;;  %787 = vmatprep.subr.bf16.mxu1 %v803_v3 }
   0xf   :  { %743 = vmatpush3.bf16.msra.mxu0 %v803_v3  ;;  %795 = vmatpush3.bf16.msra.mxu1 %v803_v3 }
  0x10   :  { %744 = vmatprep.subr.bf16.mxu0 %v804_v6  ;;  %788 = vmatprep.subr.bf16.mxu1 %v804_v6 }
  0x13   :  { %745 = vmatpush3.bf16.msra.mxu0 %v804_v6  ;;  %796 = vmatpush3.bf16.msra.mxu1 %v804_v6 }
  0x14   :  { %746 = vmatprep.subr.bf16.mxu0 %v805_v7  ;;  %789 = vmatprep.subr.bf16.mxu1 %v805_v7 }
  0x17   :  { %747 = vmatpush3.bf16.msra.mxu0 %v805_v7  ;;  %797 = vmatpush3.bf16.msra.mxu1 %v805_v7 }
  0x18   :  { %748 = vmatprep.subr.bf16.mxu0 %v806_v8  ;;  %790 = vmatprep.subr.bf16.mxu1 %v806_v8 }
  0x1b   :  { %749 = vmatpush3.bf16.msra.mxu0 %v806_v8  ;;  %798 = vmatpush3.bf16.msra.mxu1 %v806_v8 }
  0x1c   :  { %750 = vmatprep.subr.bf16.mxu0 %v807_v9  ;;  %791 = vmatprep.subr.bf16.mxu1 %v807_v9 }
  0x1f   :  { %751 = vmatpush3.bf16.msra.mxu0 %v807_v9  ;;  %799 = vmatpush3.bf16.msra.mxu1 %v807_v9 }
  0x22   :  { %753 = vmatmul.mubr.bf16.vlgmr.msra.gmra.mxu0 %v810_v10  ;;  %769 = vmatmul.mubr.bf16.vlgmr.msra.gmra.mxu1 %v811_v11 }
  0x23   :  { %756 = vmatprep.mubr.bf16.mxu0 %v812_v12  ;;  %772 = vmatprep.mubr.bf16.mxu1 %v813_v13 }
  0x2a   :  { %757 = vmatmul.mubr.bf16.gmra.mxu0 %v814_v14  ;;  %773 = vmatmul.mubr.bf16.gmra.mxu1 %v815_v15 }
  0x2b   :  { %760 = vmatprep.mubr.bf16.mxu0 %v816_v16  ;;  %776 = vmatprep.mubr.bf16.mxu1 %v817_v17 }
  0x32   :  { %761 = vmatmul.mubr.bf16.gmra.mxu0 %v818_v18  ;;  %777 = vmatmul.mubr.bf16.gmra.mxu1 %v819_v19 }
  0x33   :  { %764 = vmatprep.mubr.bf16.mxu0 %v820_v20  ;;  %780 = vmatprep.mubr.bf16.mxu1 %v821_v21 }
  0x3a   :  { %765 = vmatmul.mubr.bf16.gmra.mxu0 %v822_v22  ;;  %781 = vmatmul.mubr.bf16.gmra.mxu1 %v823_v23 }
  0xe2   :  { %v754_v24 = vpop.f32.mrf.mxu0  ;;  %v770_v25 = vpop.f32.mrf.mxu1 }
  0xe4   :  { %v238_v26 = vpop.f32.mrf.mxu0  ;;  %v302_v27 = vpop.f32.mrf.mxu1 }
  0xe6   :  { %v755_v28 = vpop.f32.mrf.mxu0  ;;  %v771_v29 = vpop.f32.mrf.mxu1 }
  0xe7   :  { %v625_v30 = vpack.c.bf16 %v755_v28, %v754_v24  ;;  %v665_v31 = vpack.c.bf16 %v771_v29, %v770_v25 }
  0xe8   :  { %v241_v32 = vpop.f32.mrf.mxu0  ;;  %v305_v33 = vpop.f32.mrf.mxu1 }
  0xe9   :  { %697 = vst [vmem:[%s961_s2 + $0x8] sm:$0xff] %v625_v30   ;;  %705 = vst [vmem:[%s961_s2 + $0x48] sm:$0xff] %v665_v31   ;;  %v620_v34 = vpack.c.bf16 %v241_v32, %v238_v26  ;;  %v660_v35 = vpack.c.bf16 %v305_v33, %v302_v27 }
  0xea   :  { %v758_v36 = vpop.f32.mrf.mxu0  ;;  %v774_v37 = vpop.f32.mrf.mxu1 }
  0xeb   :  { %621 = vst [vmem:[%s961_s2] sm:$0xff] %v620_v34   ;;  %704 = vst [vmem:[%s961_s2 + $0x40] sm:$0xff] %v660_v35  }
  0xec   :  { %v254_v38 = vpop.f32.mrf.mxu0  ;;  %v318_v39 = vpop.f32.mrf.mxu1 }
  0xee   :  { %v759_v40 = vpop.f32.mrf.mxu0  ;;  %v775_v41 = vpop.f32.mrf.mxu1 }
  0xef   :  { %v635_v42 = vpack.c.bf16 %v759_v40, %v758_v36  ;;  %v675_v43 = vpack.c.bf16 %v775_v41, %v774_v37 }
  0xf0   :  { %v257_v44 = vpop.f32.mrf.mxu0  ;;  %v321_v45 = vpop.f32.mrf.mxu1 }
  0xf1   :  { %699 = vst [vmem:[%s961_s2 + $0x18] sm:$0xff] %v635_v42   ;;  %707 = vst [vmem:[%s961_s2 + $0x58] sm:$0xff] %v675_v43   ;;  %v630_v46 = vpack.c.bf16 %v257_v44, %v254_v38  ;;  %v670_v47 = vpack.c.bf16 %v321_v45, %v318_v39 }
  0xf2   :  { %v762_v48 = vpop.f32.mrf.mxu0  ;;  %v778_v49 = vpop.f32.mrf.mxu1 }
  0xf3   :  { %698 = vst [vmem:[%s961_s2 + $0x10] sm:$0xff] %v630_v46   ;;  %706 = vst [vmem:[%s961_s2 + $0x50] sm:$0xff] %v670_v47  }
  0xf4   :  { %v270_v50 = vpop.f32.mrf.mxu0  ;;  %v334_v51 = vpop.f32.mrf.mxu1 }
  0xf6   :  { %v763_v52 = vpop.f32.mrf.mxu0  ;;  %v779_v53 = vpop.f32.mrf.mxu1 }
  0xf7   :  { %v645_v54 = vpack.c.bf16 %v763_v52, %v762_v48  ;;  %v685_v55 = vpack.c.bf16 %v779_v53, %v778_v49 }
  0xf8   :  { %v273_v56 = vpop.f32.mrf.mxu0  ;;  %v337_v57 = vpop.f32.mrf.mxu1 }
  0xf9   :  { %701 = vst [vmem:[%s961_s2 + $0x28] sm:$0xff] %v645_v54   ;;  %709 = vst [vmem:[%s961_s2 + $0x68] sm:$0xff] %v685_v55   ;;  %v640_v58 = vpack.c.bf16 %v273_v56, %v270_v50  ;;  %v680_v59 = vpack.c.bf16 %v337_v57, %v334_v51 }
  0xfa   :  { %v766_v60 = vpop.f32.mrf.mxu0  ;;  %v782_v61 = vpop.f32.mrf.mxu1 }
  0xfb   :  { %700 = vst [vmem:[%s961_s2 + $0x20] sm:$0xff] %v640_v58   ;;  %708 = vst [vmem:[%s961_s2 + $0x60] sm:$0xff] %v680_v59  }
  0xfc   :  { %v286_v62 = vpop.f32.mrf.mxu0  ;;  %v350_v63 = vpop.f32.mrf.mxu1 }
  0xfe   :  { %v767_v0 = vpop.f32.mrf.mxu0  ;;  %v783_v1 = vpop.f32.mrf.mxu1 }
  0xff   :  { %v655_v2 = vpack.c.bf16 %v767_v0, %v766_v60  ;;  %v695_v3 = vpack.c.bf16 %v783_v1, %v782_v61 }
 0x100   :  { %v289_v4 = vpop.f32.mrf.mxu0  ;;  %v353_v5 = vpop.f32.mrf.mxu1 }
 0x101   :  { %703 = vst [vmem:[%s961_s2 + $0x38] sm:$0xff] %v655_v2   ;;  %711 = vst [vmem:[%s961_s2 + $0x78] sm:$0xff] %v695_v3   ;;  %v650_v6 = vpack.c.bf16 %v289_v4, %v286_v62  ;;  %v690_v7 = vpack.c.bf16 %v353_v5, %v350_v63 }
 0x103   :  { %702 = vst [vmem:[%s961_s2 + $0x30] sm:$0xff] %v650_v6   ;;  %710 = vst [vmem:[%s961_s2 + $0x70] sm:$0xff] %v690_v7  }

// kernel: gconv_forward.5
= control target key start
LH: loop header
LB: loop body
LE: loop exit
PB: predicated region body
PF: predicated region fallthrough
CT: control target
= control target key end

     0   :  { %s1771_s0 = inlined_call_operand.<no memory space> [shape: s32[1], index: 0, kind: input, shape index: {}]   ;;  %s1772_s1 = inlined_call_operand.<no memory space> [shape: s32[1], index: 1, kind: input, shape index: {}]   ;;  %s1773_s3 = inlined_call_operand.vmem [shape: bf16[256,128], index: 3, kind: input, shape index: {}]   ;;  %s1774_s4 = inlined_call_operand.vmem [shape: bf16[8,256], index: 4, kind: input, shape index: {}]   ;;  %s1775_s5 = inlined_call_operand.vmem [shape: f32[1,128], index: 5, kind: input, shape index: {}]   ;;  %s1776_s6 = inlined_call_operand.vmem [shape: f32[1,128], index: 6, kind: input, shape index: {}]   ;;  %s1777_s7 = inlined_call_operand.vmem [shape: bf16[256,128], index: 7, kind: output, shape index: {0}]   ;;  %s1778_s8 = inlined_call_operand.vmem [shape: f32[1,8,128], index: 8, kind: output, shape index: {1}]   ;;  %s1779_s2 = inlined_call_operand.vmem [shape: bf16[256,256], index: 2, kind: input, shape index: {}]  }
   0x1   :  { %p1070_p0 = scmp.gt.s32.totalorder %s1772_s1, 0  ;;  %v1073_v0 = vld [vmem:[%s1775_s5] ss:$0 sm:$0xff]  ;;  %p1074_p1 = scmp.le.s32.totalorder %s1771_s0, 0 }
   0x2   :  { %85 = vst [vmem:[#allocation2 + $0xb0] sm:$0xff] %v1073_v0  ;;  %86 = vst [vmem:[#allocation2] sm:$0xff] %v1073_v0  ;;  %p1075_p2 = scmp.ge.s32.totalorder %s1772_s1, 0 }
   0x3   :  { %87 = vst [vmem:[#allocation2 + $0xd8] sm:$0xff] %v1073_v0  ;;  %88 = vst [vmem:[#allocation2 + $0x18] sm:$0xff] %v1073_v0  ;;  %s1781_s1 = smov (%p1070_p0, %s1772_s1), 0 }
   0x4   :  { %89 = vst [vmem:[#allocation2 + $0x50] sm:$0xff] %v1073_v0  ;;  %90 = vst [vmem:[#allocation2 + $0x68] sm:$0xff] %v1073_v0  ;;  %p121_p3 = pnand %p1075_p2, %p1074_p1  ;;  %p59_p4 = scmp.gt.s32.totalorder %s1781_s1, %s1771_s0 }
   0x5   :  { %91 = vst [vmem:[#allocation2 + $0x30] sm:$0xff] %v1073_v0  ;;  %92 = vst [vmem:[#allocation2 + $0x48] sm:$0xff] %v1073_v0 }
   0x6   :  { %93 = vst [vmem:[#allocation2 + $0x80] sm:$0xff] %v1073_v0  ;;  %94 = vst [vmem:[#allocation2 + $0x88] sm:$0xff] %v1073_v0  ;;  %s1783_s1 = smov (!%p59_p4, %s1781_s1), %s1771_s0 }
   0x7   :  { %95 = vst [vmem:[#allocation2 + $0xe8] sm:$0xff] %v1073_v0  ;;  %96 = vst [vmem:[#allocation2 + $0xb8] sm:$0xff] %v1073_v0  ;;  %s1071_s22 = sshll.u32 %s1783_s1, 1 }
   0x8   :  { %97 = vst [vmem:[#allocation2 + $0x60] sm:$0xff] %v1073_v0  ;;  %98 = vst [vmem:[#allocation2 + $0xf0] sm:$0xff] %v1073_v0  ;;  %p62_p5 = scmp.lt.s32.totalorder %s1071_s22, 1 }
   0x9   :  { %99 = vst [vmem:[#allocation2 + $0x8] sm:$0xff] %v1073_v0  ;;  %100 = vst [vmem:[#allocation2 + $0x78] sm:$0xff] %v1073_v0 }
   0xa   :  { %101 = vst [vmem:[#allocation2 + $0x38] sm:$0xff] %v1073_v0  ;;  %102 = vst [vmem:[#allocation2 + $0x58] sm:$0xff] %v1073_v0  ;;  %s1785_s22 = smov (!%p62_p5, %s1071_s22), 1 }
   0xb   :  { %103 = vst [vmem:[#allocation2 + $0x40] sm:$0xff] %v1073_v0  ;;  %104 = vst [vmem:[#allocation2 + $0xc8] sm:$0xff] %v1073_v0  ;;  %s1072_s23 = sshll.u32 %s1785_s22, 2 }
   0xc   :  { %105 = vst [vmem:[#allocation2 + $0xe0] sm:$0xff] %v1073_v0  ;;  %106 = vst [vmem:[#allocation2 + $0x90] sm:$0xff] %v1073_v0  ;;  %s1579_s26 = scalar_lea.vmem %s1779_s2, %s1072_s23 }
   0xd   :  { %107 = vst [vmem:[#allocation2 + $0x70] sm:$0xff] %v1073_v0  ;;  %108 = vst [vmem:[#allocation2 + $0xc0] sm:$0xff] %v1073_v0  ;;  %124 = sbr.rel (%p121_p3) target bundleno = 311 (0x137), region = 29 }
   0xe   :  { %109 = vst [vmem:[#allocation2 + $0xa8] sm:$0xff] %v1073_v0  ;;  %110 = vst [vmem:[#allocation2 + $0xd0] sm:$0xff] %v1073_v0 }
   0xf   :  { %111 = vst [vmem:[#allocation2 + $0x10] sm:$0xff] %v1073_v0  ;;  %112 = vst [vmem:[#allocation2 + $0x28] sm:$0xff] %v1073_v0 }
  0x10   :  { %113 = vst [vmem:[#allocation2 + $0xa0] sm:$0xff] %v1073_v0  ;;  %114 = vst [vmem:[#allocation2 + $0xf8] sm:$0xff] %v1073_v0 }
  0x11   :  { %115 = vst [vmem:[#allocation2 + $0x20] sm:$0xff] %v1073_v0  ;;  %116 = vst [vmem:[#allocation2 + $0x98] sm:$0xff] %v1073_v0 }
  0x12   :  { %v1436_v1 = vld [vmem:[%s1773_s3 + $0x78] sm:$0xff]   ;;  %v1438_v3 = vld [vmem:[%s1773_s3 + $0x70] sm:$0xff]   ;;  %v1440_v5 = vld [vmem:[%s1773_s3 + $0x68] sm:$0xff]  }
  0x13   :  { %v1437_v2 = vld [vmem:[%s1773_s3 + $0x38] sm:$0xff]   ;;  %1286 = vmatprep.subr.bf16.mxu0 %v1436_v1  ;;  %1420 = vmatprep.subr.bf16.mxu1 %v1436_v1  ;;  %v1439_v4 = vld [vmem:[%s1773_s3 + $0x30] sm:$0xff]   ;;  %v1441_v6 = vld [vmem:[%s1773_s3 + $0x28] sm:$0xff]  }
  0x14   :  { %1287 = vmatpush3.bf16.msra.mxu0 %v1437_v2  ;;  %1428 = vmatpush3.bf16.msra.mxu1 %v1437_v2  ;;  %v1442_v7 = vld [vmem:[%s1773_s3 + $0x60] sm:$0xff]   ;;  %v1444_v9 = vld [vmem:[%s1773_s3 + $0x58] sm:$0xff]   ;;  %v1446_v11 = vld [vmem:[%s1773_s3 + $0x50] sm:$0xff]  }
  0x15   :  { %1288 = vmatprep.subr.bf16.mxu0 %v1438_v3  ;;  %1421 = vmatprep.subr.bf16.mxu1 %v1438_v3  ;;  %v1443_v8 = vld [vmem:[%s1773_s3 + $0x20] sm:$0xff]   ;;  %v1445_v10 = vld [vmem:[%s1773_s3 + $0x18] sm:$0xff]   ;;  %v1447_v14 = vld [vmem:[%s1773_s3 + $0x10] sm:$0xff]  }
  0x16   :  { %v1454_v12 = vld [vmem:[%s1579_s26 + $0x4] ss:$8 sps:$4 sm:$0xff]   ;;  %v1452_v19 = vld [vmem:[%s1579_s26] ss:$8 sps:$4 sm:$0xff]   ;;  %v1458_v21 = vld [vmem:[%s1579_s26 + $0x14] ss:$8 sps:$4 sm:$0xff]  }
  0x17   :  { %v1457_v13 = vld [vmem:[%s1579_s26 + $0x84] ss:$8 sps:$4 sm:$0xff]   ;;  %514 = vmatprep.mubr.bf16.mxu0 %v1454_v12  ;;  %v1455_v20 = vld [vmem:[%s1579_s26 + $0x80] ss:$8 sps:$4 sm:$0xff]   ;;  %v1460_v22 = vld [vmem:[%s1579_s26 + $0x94] ss:$8 sps:$4 sm:$0xff]  }
  0x18   :  { %1289 = vmatpush3.bf16.msra.mxu0 %v1439_v4  ;;  %1429 = vmatpush3.bf16.msra.mxu1 %v1439_v4  ;;  %v1448_v15 = vld [vmem:[%s1773_s3 + $0x48] sm:$0xff]   ;;  %v1450_v17 = vld [vmem:[%s1773_s3 + $0x40] sm:$0xff]   ;;  %v1462_v23 = vld [vmem:[%s1579_s26 + $0x10] ss:$8 sps:$4 sm:$0xff]  }
  0x19   :  { %1290 = vmatprep.subr.bf16.mxu0 %v1440_v5  ;;  %1422 = vmatprep.subr.bf16.mxu1 %v1440_v5  ;;  %v1449_v16 = vld [vmem:[%s1773_s3 + $0x8] sm:$0xff]   ;;  %v1451_v18 = vld [vmem:[%s1773_s3] sm:$0xff]   ;;  %v1463_v24 = vld [vmem:[%s1579_s26 + $0x90] ss:$8 sps:$4 sm:$0xff]  }
  0x1a   :  { %578 = vmatprep.mubr.bf16.mxu1 %v1457_v13  ;;  %v1464_v25 = vld [vmem:[%s1579_s26 + $0x24] ss:$8 sps:$4 sm:$0xff]   ;;  %v1468_v27 = vld [vmem:[%s1579_s26 + $0x20] ss:$8 sps:$4 sm:$0xff]   ;;  %v1470_v29 = vld [vmem:[%s1579_s26 + $0x34] ss:$8 sps:$4 sm:$0xff]  }
  0x1b   :  { %v1466_v26 = vld [vmem:[%s1579_s26 + $0xa4] ss:$8 sps:$4 sm:$0xff]   ;;  %v1469_v28 = vld [vmem:[%s1579_s26 + $0xa0] ss:$8 sps:$4 sm:$0xff]   ;;  %v1472_v30 = vld [vmem:[%s1579_s26 + $0xb4] ss:$8 sps:$4 sm:$0xff]  }
  0x1c   :  { %1291 = vmatpush3.bf16.msra.mxu0 %v1441_v6  ;;  %1430 = vmatpush3.bf16.msra.mxu1 %v1441_v6  ;;  %v1474_v31 = vld [vmem:[%s1579_s26 + $0x30] ss:$8 sps:$4 sm:$0xff]   ;;  %v1476_v33 = vld [vmem:[%s1579_s26 + $0x44] ss:$8 sps:$4 sm:$0xff]   ;;  %v1480_v35 = vld [vmem:[%s1579_s26 + $0x40] ss:$8 sps:$4 sm:$0xff]  }
  0x1d   :  { %1292 = vmatprep.subr.bf16.mxu0 %v1442_v7  ;;  %1423 = vmatprep.subr.bf16.mxu1 %v1442_v7  ;;  %v1475_v32 = vld [vmem:[%s1579_s26 + $0xb0] ss:$8 sps:$4 sm:$0xff]   ;;  %v1478_v34 = vld [vmem:[%s1579_s26 + $0xc4] ss:$8 sps:$4 sm:$0xff]   ;;  %v1481_v36 = vld [vmem:[%s1579_s26 + $0xc0] ss:$8 sps:$4 sm:$0xff]  }
  0x1e   :  { %v1482_v37 = vld [vmem:[%s1579_s26 + $0x54] ss:$8 sps:$4 sm:$0xff]   ;;  %v1486_v39 = vld [vmem:[%s1579_s26 + $0x50] ss:$8 sps:$4 sm:$0xff]   ;;  %v1488_v41 = vld [vmem:[%s1579_s26 + $0x64] ss:$8 sps:$4 sm:$0xff]  }
  0x1f   :  { %v1484_v38 = vld [vmem:[%s1579_s26 + $0xd4] ss:$8 sps:$4 sm:$0xff]   ;;  %v1487_v40 = vld [vmem:[%s1579_s26 + $0xd0] ss:$8 sps:$4 sm:$0xff]   ;;  %v1490_v42 = vld [vmem:[%s1579_s26 + $0xe4] ss:$8 sps:$4 sm:$0xff]  }
  0x20   :  { %1293 = vmatpush3.bf16.msra.mxu0 %v1443_v8  ;;  %1431 = vmatpush3.bf16.msra.mxu1 %v1443_v8  ;;  %v1492_v43 = vld [vmem:[%s1579_s26 + $0x60] ss:$8 sps:$4 sm:$0xff]   ;;  %v1494_v45 = vld [vmem:[%s1579_s26 + $0x74] ss:$8 sps:$4 sm:$0xff]   ;;  %v1498_v47 = vld [vmem:[%s1579_s26 + $0x70] ss:$8 sps:$4 sm:$0xff]  }
  0x21   :  { %1294 = vmatprep.subr.bf16.mxu0 %v1444_v9  ;;  %1424 = vmatprep.subr.bf16.mxu1 %v1444_v9  ;;  %v1493_v44 = vld [vmem:[%s1579_s26 + $0xe0] ss:$8 sps:$4 sm:$0xff]   ;;  %v1496_v46 = vld [vmem:[%s1579_s26 + $0xf4] ss:$8 sps:$4 sm:$0xff]   ;;  %v1499_v48 = vld [vmem:[%s1579_s26 + $0xf0] ss:$8 sps:$4 sm:$0xff]  }
  0x22   :  { %v162_v51 = vld [vmem:[#allocation2 + $0xb0] sm:$0xff]  ;;  %v178_v53 = vld [vmem:[#allocation2 + $0x38] sm:$0xff]  ;;  %v163_v61 = vld [vmem:[#allocation2] sm:$0xff] }
  0x23   :  { %v179_v63 = vld [vmem:[#allocation2 + $0x58] sm:$0xff]  ;;  %v180_v9 = vld [vmem:[#allocation2 + $0x40] sm:$0xff] }
  0x24   :  { %1295 = vmatpush3.bf16.msra.mxu0 %v1445_v10  ;;  %1432 = vmatpush3.bf16.msra.mxu1 %v1445_v10  ;;  %v164_v7 = vld [vmem:[#allocation2 + $0xd8] sm:$0xff] }
  0x25   :  { %1296 = vmatprep.subr.bf16.mxu0 %v1446_v11  ;;  %1425 = vmatprep.subr.bf16.mxu1 %v1446_v11 }
  0x28   :  { %1297 = vmatpush3.bf16.msra.mxu0 %v1447_v14  ;;  %1433 = vmatpush3.bf16.msra.mxu1 %v1447_v14 }
  0x29   :  { %1298 = vmatprep.subr.bf16.mxu0 %v1448_v15  ;;  %1426 = vmatprep.subr.bf16.mxu1 %v1448_v15 }
  0x2c   :  { %1299 = vmatpush3.bf16.msra.mxu0 %v1449_v16  ;;  %1434 = vmatpush3.bf16.msra.mxu1 %v1449_v16 }
  0x2d   :  { %1300 = vmatprep.subr.bf16.mxu0 %v1450_v17  ;;  %1427 = vmatprep.subr.bf16.mxu1 %v1450_v17  ;;  %v165_v17 = vld [vmem:[#allocation2 + $0x18] sm:$0xff] }
  0x30   :  { %1301 = vmatpush3.bf16.msra.mxu0 %v1451_v18  ;;  %1435 = vmatpush3.bf16.msra.mxu1 %v1451_v18 }
  0x33   :  { %515 = vmatmul.mubr.bf16.vlgmr.msra.gmra.mxu0 %v1452_v19  ;;  %579 = vmatmul.mubr.bf16.vlgmr.msra.gmra.mxu1 %v1455_v20  ;;  %v181_v19 = vld [vmem:[#allocation2 + $0xc8] sm:$0xff] }
  0x34   :  { %522 = vmatprep.mubr.bf16.mxu0 %v1458_v21  ;;  %586 = vmatprep.mubr.bf16.mxu1 %v1460_v22 }
  0x3b   :  { %523 = vmatmul.mubr.bf16.gmra.mxu0 %v1462_v23  ;;  %587 = vmatmul.mubr.bf16.gmra.mxu1 %v1463_v24 }
  0x3c   :  { %530 = vmatprep.mubr.bf16.mxu0 %v1464_v25  ;;  %594 = vmatprep.mubr.bf16.mxu1 %v1466_v26 }
  0x43   :  { %531 = vmatmul.mubr.bf16.gmra.mxu0 %v1468_v27  ;;  %595 = vmatmul.mubr.bf16.gmra.mxu1 %v1469_v28  ;;  %v166_v27 = vld [vmem:[#allocation2 + $0x50] sm:$0xff] }
  0x44   :  { %538 = vmatprep.mubr.bf16.mxu0 %v1470_v29  ;;  %602 = vmatprep.mubr.bf16.mxu1 %v1472_v30  ;;  %v182_v29 = vld [vmem:[#allocation2 + $0xe0] sm:$0xff] }
  0x4b   :  { %539 = vmatmul.mubr.bf16.gmra.mxu0 %v1474_v31  ;;  %603 = vmatmul.mubr.bf16.gmra.mxu1 %v1475_v32 }
  0x4c   :  { %546 = vmatprep.mubr.bf16.mxu0 %v1476_v33  ;;  %610 = vmatprep.mubr.bf16.mxu1 %v1478_v34 }
  0x53   :  { %547 = vmatmul.mubr.bf16.gmra.mxu0 %v1480_v35  ;;  %611 = vmatmul.mubr.bf16.gmra.mxu1 %v1481_v36 }
  0x54   :  { %554 = vmatprep.mubr.bf16.mxu0 %v1482_v37  ;;  %618 = vmatprep.mubr.bf16.mxu1 %v1484_v38  ;;  %v167_v37 = vld [vmem:[#allocation2 + $0x68] sm:$0xff] }
  0x5b   :  { %555 = vmatmul.mubr.bf16.gmra.mxu0 %v1486_v39  ;;  %619 = vmatmul.mubr.bf16.gmra.mxu1 %v1487_v40  ;;  %v183_v39 = vld [vmem:[#allocation2 + $0x90] sm:$0xff] }
  0x5c   :  { %562 = vmatprep.mubr.bf16.mxu0 %v1488_v41  ;;  %626 = vmatprep.mubr.bf16.mxu1 %v1490_v42 }
  0x63   :  { %563 = vmatmul.mubr.bf16.gmra.mxu0 %v1492_v43  ;;  %627 = vmatmul.mubr.bf16.gmra.mxu1 %v1493_v44 }
  0x64   :  { %570 = vmatprep.mubr.bf16.mxu0 %v1494_v45  ;;  %634 = vmatprep.mubr.bf16.mxu1 %v1496_v46 }
  0x6b   :  { %571 = vmatmul.mubr.bf16.gmra.mxu0 %v1498_v47  ;;  %635 = vmatmul.mubr.bf16.gmra.mxu1 %v1499_v48  ;;  %v168_v47 = vld [vmem:[#allocation2 + $0x30] sm:$0xff] }
  0xf3   :  { %v1302_v49 = vpop.f32.mrf.mxu0  ;;  %v1350_v50 = vpop.f32.mrf.mxu1 }
  0xf5   :  { %v1303_v52 = vpop.f32.mrf.mxu0  ;;  %v1351_v54 = vpop.f32.mrf.mxu1 }
  0xf6   :  { %v1304_v55 = vadd.f32 %v1303_v52, %v1302_v49  ;;  %v1352_v56 = vadd.f32 %v1351_v54, %v1350_v50  ;;  %v184_v49 = vld [vmem:[#allocation2 + $0x70] sm:$0xff] }
  0xf7   :  { %v1305_v57 = vpop.f32.mrf.mxu0  ;;  %v1353_v58 = vpop.f32.mrf.mxu1 }
  0xf8   :  { %v643_v59 = vadd.f32 %v1304_v55, %v162_v51  ;;  %v659_v60 = vadd.f32 %v1352_v56, %v178_v53 }
  0xf9   :  { %v1306_v62 = vpop.f32.mrf.mxu0  ;;  %v1354_v0 = vpop.f32.mrf.mxu1 }
  0xfa   :  { %675 = vst [vmem:[#allocation2 + $0xb0] sm:$0xff] %v643_v59  ;;  %691 = vst [vmem:[#allocation2 + $0x38] sm:$0xff] %v659_v60  ;;  %v1307_v1 = vadd.f32 %v1306_v62, %v1305_v57  ;;  %v1355_v2 = vadd.f32 %v1354_v0, %v1353_v58  ;;  %v169_v57 = vld [vmem:[#allocation2 + $0x48] sm:$0xff]  ;;  %v185_v59 = vld [vmem:[#allocation2 + $0xc0] sm:$0xff] }
  0xfb   :  { %v1308_v3 = vpop.f32.mrf.mxu0  ;;  %v1356_v4 = vpop.f32.mrf.mxu1 }
  0xfc   :  { %v644_v5 = vadd.f32 %v1307_v1, %v163_v61  ;;  %v660_v6 = vadd.f32 %v1355_v2, %v179_v63 }
  0xfd   :  { %v1309_v8 = vpop.f32.mrf.mxu0  ;;  %v1357_v10 = vpop.f32.mrf.mxu1 }
  0xfe   :  { %676 = vst [vmem:[#allocation2] sm:$0xff] %v644_v5  ;;  %692 = vst [vmem:[#allocation2 + $0x58] sm:$0xff] %v660_v6  ;;  %v1310_v11 = vadd.f32 %v1309_v8, %v1308_v3  ;;  %v1358_v12 = vadd.f32 %v1357_v10, %v1356_v4  ;;  %v170_v3 = vld [vmem:[#allocation2 + $0x80] sm:$0xff]  ;;  %v186_v5 = vld [vmem:[#allocation2 + $0xa8] sm:$0xff] }
  0xff   :  { %v1311_v13 = vpop.f32.mrf.mxu0  ;;  %v1359_v14 = vpop.f32.mrf.mxu1 }
 0x100   :  { %v645_v15 = vadd.f32 %v1310_v11, %v164_v7  ;;  %v661_v16 = vadd.f32 %v1358_v12, %v180_v9 }
 0x101   :  { %v1312_v18 = vpop.f32.mrf.mxu0  ;;  %v1360_v20 = vpop.f32.mrf.mxu1 }
 0x102   :  { %677 = vst [vmem:[#allocation2 + $0xd8] sm:$0xff] %v645_v15  ;;  %693 = vst [vmem:[#allocation2 + $0x40] sm:$0xff] %v661_v16  ;;  %v1313_v21 = vadd.f32 %v1312_v18, %v1311_v13  ;;  %v1361_v22 = vadd.f32 %v1360_v20, %v1359_v14  ;;  %v171_v13 = vld [vmem:[#allocation2 + $0x88] sm:$0xff]  ;;  %v187_v15 = vld [vmem:[#allocation2 + $0xd0] sm:$0xff] }
 0x103   :  { %v1314_v23 = vpop.f32.mrf.mxu0  ;;  %v1362_v24 = vpop.f32.mrf.mxu1 }
 0x104   :  { %v646_v25 = vadd.f32 %v1313_v21, %v165_v17  ;;  %v662_v26 = vadd.f32 %v1361_v22, %v181_v19 }
 0x105   :  { %v1315_v28 = vpop.f32.mrf.mxu0  ;;  %v1363_v30 = vpop.f32.mrf.mxu1 }
 0x106   :  { %678 = vst [vmem:[#allocation2 + $0x18] sm:$0xff] %v646_v25  ;;  %694 = vst [vmem:[#allocation2 + $0xc8] sm:$0xff] %v662_v26  ;;  %v1316_v31 = vadd.f32 %v1315_v28, %v1314_v23  ;;  %v1364_v32 = vadd.f32 %v1363_v30, %v1362_v24  ;;  %v172_v23 = vld [vmem:[#allocation2 + $0xe8] sm:$0xff]  ;;  %v188_v25 = vld [vmem:[#allocation2 + $0x10] sm:$0xff] }
 0x107   :  { %v1317_v33 = vpop.f32.mrf.mxu0  ;;  %v1365_v34 = vpop.f32.mrf.mxu1 }
 0x108   :  { %v647_v35 = vadd.f32 %v1316_v31, %v166_v27  ;;  %v663_v36 = vadd.f32 %v1364_v32, %v182_v29 }
 0x109   :  { %v1318_v38 = vpop.f32.mrf.mxu0  ;;  %v1366_v40 = vpop.f32.mrf.mxu1 }
 0x10a   :  { %679 = vst [vmem:[#allocation2 + $0x50] sm:$0xff] %v647_v35  ;;  %695 = vst [vmem:[#allocation2 + $0xe0] sm:$0xff] %v663_v36  ;;  %v1319_v41 = vadd.f32 %v1318_v38, %v1317_v33  ;;  %v1367_v42 = vadd.f32 %v1366_v40, %v1365_v34  ;;  %v173_v33 = vld [vmem:[#allocation2 + $0xb8] sm:$0xff]  ;;  %v189_v35 = vld [vmem:[#allocation2 + $0x28] sm:$0xff] }
 0x10b   :  { %v1320_v43 = vpop.f32.mrf.mxu0  ;;  %v1368_v44 = vpop.f32.mrf.mxu1 }
 0x10c   :  { %v648_v45 = vadd.f32 %v1319_v41, %v167_v37  ;;  %v664_v46 = vadd.f32 %v1367_v42, %v183_v39 }
 0x10d   :  { %v1321_v48 = vpop.f32.mrf.mxu0  ;;  %v1369_v50 = vpop.f32.mrf.mxu1 }
 0x10e   :  { %680 = vst [vmem:[#allocation2 + $0x68] sm:$0xff] %v648_v45  ;;  %696 = vst [vmem:[#allocation2 + $0x90] sm:$0xff] %v664_v46  ;;  %v1322_v51 = vadd.f32 %v1321_v48, %v1320_v43  ;;  %v1370_v52 = vadd.f32 %v1369_v50, %v1368_v44  ;;  %v174_v43 = vld [vmem:[#allocation2 + $0x60] sm:$0xff] }
 0x10f   :  { %v1323_v53 = vpop.f32.mrf.mxu0  ;;  %v1371_v54 = vpop.f32.mrf.mxu1  ;;  %v190_v45 = vld [vmem:[#allocation2 + $0xa0] sm:$0xff] }
 0x110   :  { %v649_v55 = vadd.f32 %v1322_v51, %v168_v47  ;;  %v665_v56 = vadd.f32 %v1370_v52, %v184_v49 }
 0x111   :  { %v1324_v58 = vpop.f32.mrf.mxu0  ;;  %v1372_v60 = vpop.f32.mrf.mxu1 }
 0x112   :  { %681 = vst [vmem:[#allocation2 + $0x30] sm:$0xff] %v649_v55  ;;  %697 = vst [vmem:[#allocation2 + $0x70] sm:$0xff] %v665_v56  ;;  %v1325_v61 = vadd.f32 %v1324_v58, %v1323_v53  ;;  %v1373_v62 = vadd.f32 %v1372_v60, %v1371_v54  ;;  %v175_v53 = vld [vmem:[#allocation2 + $0xf0] sm:$0xff]  ;;  %v191_v55 = vld [vmem:[#allocation2 + $0xf8] sm:$0xff] }
 0x113   :  { %v1326_v63 = vpop.f32.mrf.mxu0  ;;  %v1374_v0 = vpop.f32.mrf.mxu1 }
 0x114   :  { %v650_v1 = vadd.f32 %v1325_v61, %v169_v57  ;;  %v666_v2 = vadd.f32 %v1373_v62, %v185_v59 }
 0x115   :  { %v1327_v4 = vpop.f32.mrf.mxu0  ;;  %v1375_v6 = vpop.f32.mrf.mxu1 }
 0x116   :  { %682 = vst [vmem:[#allocation2 + $0x48] sm:$0xff] %v650_v1  ;;  %698 = vst [vmem:[#allocation2 + $0xc0] sm:$0xff] %v666_v2  ;;  %v1328_v7 = vadd.f32 %v1327_v4, %v1326_v63  ;;  %v1376_v8 = vadd.f32 %v1375_v6, %v1374_v0  ;;  %v176_v63 = vld [vmem:[#allocation2 + $0x8] sm:$0xff]  ;;  %v192_v1 = vld [vmem:[#allocation2 + $0x20] sm:$0xff] }
 0x117   :  { %v1329_v9 = vpop.f32.mrf.mxu0  ;;  %v1377_v10 = vpop.f32.mrf.mxu1 }
 0x118   :  { %v651_v11 = vadd.f32 %v1328_v7, %v170_v3  ;;  %v667_v12 = vadd.f32 %v1376_v8, %v186_v5 }
 0x119   :  { %v1330_v14 = vpop.f32.mrf.mxu0  ;;  %v1378_v16 = vpop.f32.mrf.mxu1 }
 0x11a   :  { %683 = vst [vmem:[#allocation2 + $0x80] sm:$0xff] %v651_v11  ;;  %699 = vst [vmem:[#allocation2 + $0xa8] sm:$0xff] %v667_v12  ;;  %v1331_v17 = vadd.f32 %v1330_v14, %v1329_v9  ;;  %v1379_v18 = vadd.f32 %v1378_v16, %v1377_v10  ;;  %v177_v9 = vld [vmem:[#allocation2 + $0x78] sm:$0xff] }
 0x11b   :  { %v1332_v19 = vpop.f32.mrf.mxu0  ;;  %v1380_v20 = vpop.f32.mrf.mxu1  ;;  %v193_v11 = vld [vmem:[#allocation2 + $0x98] sm:$0xff] }
 0x11c   :  { %v652_v21 = vadd.f32 %v1331_v17, %v171_v13  ;;  %v668_v22 = vadd.f32 %v1379_v18, %v187_v15 }
 0x11d   :  { %v1333_v24 = vpop.f32.mrf.mxu0  ;;  %v1381_v26 = vpop.f32.mrf.mxu1 }
 0x11e   :  { %684 = vst [vmem:[#allocation2 + $0x88] sm:$0xff] %v652_v21  ;;  %700 = vst [vmem:[#allocation2 + $0xd0] sm:$0xff] %v668_v22  ;;  %v1334_v27 = vadd.f32 %v1333_v24, %v1332_v19  ;;  %v1382_v28 = vadd.f32 %v1381_v26, %v1380_v20 }
 0x11f   :  { %v1335_v29 = vpop.f32.mrf.mxu0  ;;  %v1383_v30 = vpop.f32.mrf.mxu1 }
 0x120   :  { %v653_v31 = vadd.f32 %v1334_v27, %v172_v23  ;;  %v669_v32 = vadd.f32 %v1382_v28, %v188_v25 }
 0x121   :  { %v1336_v34 = vpop.f32.mrf.mxu0  ;;  %v1384_v36 = vpop.f32.mrf.mxu1 }
 0x122   :  { %685 = vst [vmem:[#allocation2 + $0xe8] sm:$0xff] %v653_v31  ;;  %701 = vst [vmem:[#allocation2 + $0x10] sm:$0xff] %v669_v32  ;;  %v1337_v37 = vadd.f32 %v1336_v34, %v1335_v29  ;;  %v1385_v38 = vadd.f32 %v1384_v36, %v1383_v30 }
 0x123   :  { %v1338_v39 = vpop.f32.mrf.mxu0  ;;  %v1386_v40 = vpop.f32.mrf.mxu1 }
 0x124   :  { %v654_v41 = vadd.f32 %v1337_v37, %v173_v33  ;;  %v670_v42 = vadd.f32 %v1385_v38, %v189_v35 }
 0x125   :  { %v1339_v44 = vpop.f32.mrf.mxu0  ;;  %v1387_v46 = vpop.f32.mrf.mxu1 }
 0x126   :  { %686 = vst [vmem:[#allocation2 + $0xb8] sm:$0xff] %v654_v41  ;;  %702 = vst [vmem:[#allocation2 + $0x28] sm:$0xff] %v670_v42  ;;  %v1340_v47 = vadd.f32 %v1339_v44, %v1338_v39  ;;  %v1388_v48 = vadd.f32 %v1387_v46, %v1386_v40 }
 0x127   :  { %v1341_v49 = vpop.f32.mrf.mxu0  ;;  %v1389_v50 = vpop.f32.mrf.mxu1 }
 0x128   :  { %v655_v51 = vadd.f32 %v1340_v47, %v174_v43  ;;  %v671_v52 = vadd.f32 %v1388_v48, %v190_v45 }
 0x129   :  { %v1342_v54 = vpop.f32.mrf.mxu0  ;;  %v1390_v56 = vpop.f32.mrf.mxu1 }
 0x12a   :  { %687 = vst [vmem:[#allocation2 + $0x60] sm:$0xff] %v655_v51  ;;  %703 = vst [vmem:[#allocation2 + $0xa0] sm:$0xff] %v671_v52  ;;  %v1343_v57 = vadd.f32 %v1342_v54, %v1341_v49  ;;  %v1391_v58 = vadd.f32 %v1390_v56, %v1389_v50 }
 0x12b   :  { %v1344_v59 = vpop.f32.mrf.mxu0  ;;  %v1392_v60 = vpop.f32.mrf.mxu1 }
 0x12c   :  { %v656_v61 = vadd.f32 %v1343_v57, %v175_v53  ;;  %v672_v62 = vadd.f32 %v1391_v58, %v191_v55 }
 0x12d   :  { %v1345_v0 = vpop.f32.mrf.mxu0  ;;  %v1393_v2 = vpop.f32.mrf.mxu1 }
 0x12e   :  { %688 = vst [vmem:[#allocation2 + $0xf0] sm:$0xff] %v656_v61  ;;  %704 = vst [vmem:[#allocation2 + $0xf8] sm:$0xff] %v672_v62  ;;  %v1346_v3 = vadd.f32 %v1345_v0, %v1344_v59  ;;  %v1394_v4 = vadd.f32 %v1393_v2, %v1392_v60 }
 0x12f   :  { %v1347_v5 = vpop.f32.mrf.mxu0  ;;  %v1395_v6 = vpop.f32.mrf.mxu1 }
 0x130   :  { %v657_v7 = vadd.f32 %v1346_v3, %v176_v63  ;;  %v673_v8 = vadd.f32 %v1394_v4, %v192_v1 }
 0x131   :  { %v1348_v10 = vpop.f32.mrf.mxu0  ;;  %v1396_v12 = vpop.f32.mrf.mxu1 }
 0x132   :  { %689 = vst [vmem:[#allocation2 + $0x8] sm:$0xff] %v657_v7  ;;  %705 = vst [vmem:[#allocation2 + $0x20] sm:$0xff] %v673_v8  ;;  %v1349_v13 = vadd.f32 %v1348_v10, %v1347_v5  ;;  %v1397_v14 = vadd.f32 %v1396_v12, %v1395_v6 }
 0x134   :  { %v658_v15 = vadd.f32 %v1349_v13, %v177_v9  ;;  %v674_v16 = vadd.f32 %v1397_v14, %v193_v11 }
 0x136   :  { %690 = vst [vmem:[#allocation2 + $0x78] sm:$0xff] %v658_v15  ;;  %706 = vst [vmem:[#allocation2 + $0x98] sm:$0xff] %v674_v16 }
 0x137 PF:  { %v1664_v19 = vld [vmem:[%s1776_s6] ss:$0 sm:$0xff]  ;;  %v723_v29 = vld [vmem:[#allocation2 + $0xf0] sm:$0xff]  ;;  %v720_v40 = vld [vmem:[#allocation2 + $0xe8] sm:$0xff] }
 0x138   :  { %v722_v28 = vld [vmem:[#allocation2 + $0x60] sm:$0xff]  ;;  %vm755_vm7 = vcmp.gt.f32.partialorder %v723_v29, 0.0  ;;  %v794_v43 = vmul.f32 %v1664_v19, %v723_v29  ;;  %v721_v44 = vld [vmem:[#allocation2 + $0xb8] sm:$0xff]  ;;  %vm752_vm10 = vcmp.gt.f32.partialorder %v720_v40, 0.0  ;;  %v719_v57 = vld [vmem:[#allocation2 + $0x88] sm:$0xff]  ;;  %v791_v59 = vmul.f32 %v1664_v19, %v720_v40 }
 0x139   :  { %v724_v22 = vld [vmem:[#allocation2 + $0x8] sm:$0xff]  ;;  %vm754_vm6 = vcmp.gt.f32.partialorder %v722_v28, 0.0  ;;  %v793_v42 = vmul.f32 %v1664_v19, %v722_v28  ;;  %v718_v53 = vld [vmem:[#allocation2 + $0x80] sm:$0xff]  ;;  %vm753_vm11 = vcmp.gt.f32.partialorder %v721_v44, 0.0  ;;  %v792_v60 = vmul.f32 %v1664_v19, %v721_v44  ;;  %v732_v63 = vld [vmem:[#allocation2 + $0x70] sm:$0xff] }
 0x13a   :  { %vm756_vm2 = vcmp.gt.f32.partialorder %v724_v22, 0.0  ;;  %v795_v25 = vmul.f32 %v1664_v19, %v724_v22  ;;  %v734_v48 = vld [vmem:[#allocation2 + $0xa8] sm:$0xff]  ;;  %v826_v51 = vsel %vm755_vm7, %v723_v29, %v794_v43  ;;  %v735_v52 = vld [vmem:[#allocation2 + $0xd0] sm:$0xff]  ;;  %vm750_vm14 = vcmp.gt.f32.partialorder %v718_v53, 0.0  ;;  %v733_v0 = vld [vmem:[#allocation2 + $0xc0] sm:$0xff] }
 0x13b   :  { %v736_v32 = vld [vmem:[#allocation2 + $0x10] sm:$0xff]  ;;  %v737_v37 = vld [vmem:[#allocation2 + $0x28] sm:$0xff]  ;;  %v825_v50 = vsel %vm754_vm6, %v722_v28, %v793_v42  ;;  %vm766_vm12 = vcmp.gt.f32.partialorder %v734_v48, 0.0  ;;  %vm767_vm13 = vcmp.gt.f32.partialorder %v735_v52, 0.0  ;;  %v805_v61 = vmul.f32 %v1664_v19, %v734_v48  ;;  %v730_v12 = vld [vmem:[#allocation2 + $0xe0] sm:$0xff] }
 0x13c   :  { %v738_v24 = vld [vmem:[#allocation2 + $0xa0] sm:$0xff]  ;;  %v739_v27 = vld [vmem:[#allocation2 + $0xf8] sm:$0xff]  ;;  %v827_v34 = vsel %vm756_vm2, %v724_v22, %v795_v25  ;;  %vm768_vm8 = vcmp.gt.f32.partialorder %v736_v32, 0.0  ;;  %vm769_vm9 = vcmp.gt.f32.partialorder %v737_v37, 0.0  ;;  %v807_v46 = vmul.f32 %v1664_v19, %v736_v32  ;;  %v716_v4 = vld [vmem:[#allocation2 + $0x30] sm:$0xff] }
 0x13d   :  { %v740_v17 = vld [vmem:[#allocation2 + $0x20] sm:$0xff]  ;;  %v741_v18 = vld [vmem:[#allocation2 + $0x98] sm:$0xff]  ;;  %vm770_vm4 = vcmp.gt.f32.partialorder %v738_v24, 0.0  ;;  %vm771_vm5 = vcmp.gt.f32.partialorder %v739_v27, 0.0  ;;  %v809_v36 = vmul.f32 %v1664_v19, %v738_v24  ;;  %v810_v39 = vmul.f32 %v1664_v19, %v739_v27  ;;  %v717_v9 = vld [vmem:[#allocation2 + $0x48] sm:$0xff] }
 0x13e   :  { %vm772_vm0 = vcmp.gt.f32.partialorder %v740_v17, 0.0  ;;  %vm773_vm1 = vcmp.gt.f32.partialorder %v741_v18, 0.0  ;;  %v811_v20 = vmul.f32 %v1664_v19, %v740_v17  ;;  %v812_v21 = vmul.f32 %v1664_v19, %v741_v18  ;;  %v725_v23 = vld [vmem:[#allocation2 + $0x78] sm:$0xff]  ;;  %v731_v13 = vld [vmem:[#allocation2 + $0x90] sm:$0xff]  ;;  %v715_v22 = vld [vmem:[#allocation2 + $0x68] sm:$0xff] }
 0x13f   :  { %vm757_vm3 = vcmp.gt.f32.partialorder %v725_v23, 0.0  ;;  %v796_v26 = vmul.f32 %v1664_v19, %v725_v23  ;;  %v841_v41 = vsel %vm770_vm4, %v738_v24, %v809_v36  ;;  %v842_v45 = vsel %vm771_vm5, %v739_v27, %v810_v39  ;;  %v728_v25 = vld [vmem:[#allocation2 + $0x40] sm:$0xff] }
 0x140   :  { %v843_v30 = vsel %vm772_vm0, %v740_v17, %v811_v20  ;;  %v844_v31 = vsel %vm773_vm1, %v741_v18, %v812_v21  ;;  %v808_v47 = vmul.f32 %v1664_v19, %v737_v37  ;;  %v859_v49 = vpack.c.bf16 %v842_v45, %v841_v41  ;;  %v714_v21 = vld [vmem:[#allocation2 + $0x50] sm:$0xff]  ;;  %v726_v41 = vld [vmem:[#allocation2 + $0x38] sm:$0xff] }
 0x141   :  { %v860_v33 = vpack.c.bf16 %v844_v31, %v843_v30  ;;  %v828_v35 = vsel %vm757_vm3, %v725_v23, %v796_v26  ;;  %v851_v54 = vpack.c.bf16 %v826_v51, %v825_v50  ;;  %v839_v55 = vsel %vm768_vm8, %v736_v32, %v807_v46  ;;  %v729_v30 = vld [vmem:[#allocation2 + $0xc8] sm:$0xff]  ;;  %v727_v45 = vld [vmem:[#allocation2 + $0x58] sm:$0xff]  ;;  %v710_v46 = vld [vmem:[#allocation2 + $0xb0] sm:$0xff] }
 0x142   :  { %v852_v38 = vpack.c.bf16 %v828_v35, %v827_v34  ;;  %v840_v56 = vsel %vm769_vm9, %v737_v37, %v808_v47  ;;  %1284 = vst [vmem:[%s1777_s7 + $0x70] sm:$0xff] %v859_v49   ;;  %v806_v62 = vmul.f32 %v1664_v19, %v735_v52  ;;  %v823_v1 = vsel %vm752_vm10, %v720_v40, %v791_v59  ;;  %v713_v37 = vld [vmem:[#allocation2 + $0x18] sm:$0xff]  ;;  %v711_v50 = vld [vmem:[#allocation2] sm:$0xff] }
 0x143   :  { %1285 = vst [vmem:[%s1777_s7 + $0x78] sm:$0xff] %v860_v33   ;;  %1398 = vmatprep.subr.bf16.mxu0 %v860_v33  ;;  %v858_v58 = vpack.c.bf16 %v840_v56, %v839_v55  ;;  %1276 = vst [vmem:[%s1777_s7 + $0x30] sm:$0xff] %v851_v54   ;;  %v824_v2 = vsel %vm753_vm11, %v721_v44, %v792_v60  ;;  %vm751_vm15 = vcmp.gt.f32.partialorder %v719_v57, 0.0  ;;  %vm764_vm0 = vcmp.gt.f32.partialorder %v732_v63, 0.0  ;;  %v712_v33 = vld [vmem:[#allocation2 + $0xd8] sm:$0xff]  ;;  %v1005_v56 = vld [vmem:[%s1774_s4] sm:$0xff] }
 0x144   :  { %1277 = vst [vmem:[%s1777_s7 + $0x38] sm:$0xff] %v852_v38   ;;  %1399 = vmatpush3.bf16.msra.mxu0 %v852_v38  ;;  %v789_v3 = vmul.f32 %v1664_v19, %v718_v53  ;;  %v850_v5 = vpack.c.bf16 %v824_v2, %v823_v1  ;;  %v837_v6 = vsel %vm766_vm12, %v734_v48, %v805_v61  ;;  %vm765_vm1 = vcmp.gt.f32.partialorder %v733_v0, 0.0 }
 0x145   :  { %1400 = vmatprep.subr.bf16.mxu0 %v859_v49  ;;  %1283 = vst [vmem:[%s1777_s7 + $0x68] sm:$0xff] %v858_v58   ;;  %v838_v7 = vsel %vm767_vm13, %v735_v52, %v806_v62  ;;  %v790_v8 = vmul.f32 %v1664_v19, %v719_v57  ;;  %v803_v15 = vmul.f32 %v1664_v19, %v732_v63  ;;  %vm748_vm2 = vcmp.gt.f32.partialorder %v716_v4, 0.0 }
 0x146   :  { %v857_v10 = vpack.c.bf16 %v838_v7, %v837_v6  ;;  %v821_v11 = vsel %vm750_vm14, %v718_v53, %v789_v3  ;;  %1275 = vst [vmem:[%s1777_s7 + $0x28] sm:$0xff] %v850_v5   ;;  %v804_v16 = vmul.f32 %v1664_v19, %v733_v0  ;;  %vm749_vm3 = vcmp.gt.f32.partialorder %v717_v9, 0.0 }
 0x147   :  { %v822_v14 = vsel %vm751_vm15, %v719_v57, %v790_v8  ;;  %v787_v18 = vmul.f32 %v1664_v19, %v716_v4  ;;  %v788_v20 = vmul.f32 %v1664_v19, %v717_v9  ;;  %v835_v23 = vsel %vm764_vm0, %v732_v63, %v803_v15 }
 0x148   :  { %1401 = vmatpush3.bf16.msra.mxu0 %v851_v54  ;;  %1282 = vst [vmem:[%s1777_s7 + $0x60] sm:$0xff] %v857_v10   ;;  %v849_v17 = vpack.c.bf16 %v822_v14, %v821_v11  ;;  %v836_v24 = vsel %vm765_vm1, %v733_v0, %v804_v16  ;;  %vm762_vm4 = vcmp.gt.f32.partialorder %v730_v12, 0.0  ;;  %vm763_vm5 = vcmp.gt.f32.partialorder %v731_v13, 0.0 }
 0x149   :  { %1402 = vmatprep.subr.bf16.mxu0 %v858_v58  ;;  %v856_v26 = vpack.c.bf16 %v836_v24, %v835_v23  ;;  %v819_v27 = vsel %vm748_vm2, %v716_v4, %v787_v18  ;;  %v820_v28 = vsel %vm749_vm3, %v717_v9, %v788_v20  ;;  %v801_v29 = vmul.f32 %v1664_v19, %v730_v12 }
 0x14a   :  { %1274 = vst [vmem:[%s1777_s7 + $0x20] sm:$0xff] %v849_v17   ;;  %v848_v31 = vpack.c.bf16 %v820_v28, %v819_v27  ;;  %v802_v32 = vmul.f32 %v1664_v19, %v731_v13  ;;  %vm746_vm6 = vcmp.gt.f32.partialorder %v714_v21, 0.0  ;;  %vm747_vm7 = vcmp.gt.f32.partialorder %v715_v22, 0.0 }
 0x14b   :  { %1281 = vst [vmem:[%s1777_s7 + $0x58] sm:$0xff] %v856_v26   ;;  %v833_v34 = vsel %vm762_vm4, %v730_v12, %v801_v29  ;;  %v785_v35 = vmul.f32 %v1664_v19, %v714_v21  ;;  %v786_v36 = vmul.f32 %v1664_v19, %v715_v22  ;;  %vm760_vm8 = vcmp.gt.f32.partialorder %v728_v25, 0.0 }
 0x14c   :  { %1403 = vmatpush3.bf16.msra.mxu0 %v850_v5  ;;  %1273 = vst [vmem:[%s1777_s7 + $0x18] sm:$0xff] %v848_v31   ;;  %v834_v38 = vsel %vm763_vm5, %v731_v13, %v802_v32  ;;  %vm761_vm9 = vcmp.gt.f32.partialorder %v729_v30, 0.0  ;;  %v799_v39 = vmul.f32 %v1664_v19, %v728_v25  ;;  %v800_v40 = vmul.f32 %v1664_v19, %v729_v30 }
 0x14d   :  { %1404 = vmatprep.subr.bf16.mxu0 %v857_v10  ;;  %v855_v42 = vpack.c.bf16 %v834_v38, %v833_v34  ;;  %v817_v43 = vsel %vm746_vm6, %v714_v21, %v785_v35  ;;  %v818_v44 = vsel %vm747_vm7, %v715_v22, %v786_v36  ;;  %vm744_vm10 = vcmp.gt.f32.partialorder %v712_v33, 0.0 }
 0x14e   :  { %v847_v47 = vpack.c.bf16 %v818_v44, %v817_v43  ;;  %v831_v48 = vsel %vm760_vm8, %v728_v25, %v799_v39  ;;  %v832_v49 = vsel %vm761_vm9, %v729_v30, %v800_v40  ;;  %vm745_vm11 = vcmp.gt.f32.partialorder %v713_v37, 0.0 }
 0x14f   :  { %1280 = vst [vmem:[%s1777_s7 + $0x50] sm:$0xff] %v855_v42   ;;  %v854_v51 = vpack.c.bf16 %v832_v49, %v831_v48  ;;  %v783_v52 = vmul.f32 %v1664_v19, %v712_v33  ;;  %v784_v53 = vmul.f32 %v1664_v19, %v713_v37  ;;  %vm758_vm12 = vcmp.gt.f32.partialorder %v726_v41, 0.0 }
 0x150   :  { %1405 = vmatpush3.bf16.msra.mxu0 %v849_v17  ;;  %1272 = vst [vmem:[%s1777_s7 + $0x10] sm:$0xff] %v847_v47   ;;  %vm759_vm13 = vcmp.gt.f32.partialorder %v727_v45, 0.0  ;;  %v797_v54 = vmul.f32 %v1664_v19, %v726_v41  ;;  %v798_v55 = vmul.f32 %v1664_v19, %v727_v45  ;;  %vm742_vm14 = vcmp.gt.f32.partialorder %v710_v46, 0.0 }
 0x151   :  { %1406 = vmatprep.subr.bf16.mxu0 %v856_v26  ;;  %1279 = vst [vmem:[%s1777_s7 + $0x48] sm:$0xff] %v854_v51   ;;  %v815_v57 = vsel %vm744_vm10, %v712_v33, %v783_v52  ;;  %v816_v58 = vsel %vm745_vm11, %v713_v37, %v784_v53  ;;  %vm743_vm15 = vcmp.gt.f32.partialorder %v711_v50, 0.0  ;;  %v781_v59 = vmul.f32 %v1664_v19, %v710_v46 }
 0x152   :  { %v846_v60 = vpack.c.bf16 %v816_v58, %v815_v57  ;;  %v829_v61 = vsel %vm758_vm12, %v726_v41, %v797_v54  ;;  %v830_v62 = vsel %vm759_vm13, %v727_v45, %v798_v55  ;;  %v782_v63 = vmul.f32 %v1664_v19, %v711_v50 }
 0x153   :  { %v853_v0 = vpack.c.bf16 %v830_v62, %v829_v61  ;;  %v813_v1 = vsel %vm742_vm14, %v710_v46, %v781_v59  ;;  %v1158_v2 = vcombine.high %v1005_v56, %v1005_v56  ;;  %v1157_v19 = vcombine.low %v1005_v56, %v1005_v56 }
 0x154   :  { %1407 = vmatpush3.bf16.msra.mxu0 %v848_v31  ;;  %1271 = vst [vmem:[%s1777_s7 + $0x8] sm:$0xff] %v846_v60   ;;  %v814_v3 = vsel %vm743_vm15, %v711_v50, %v782_v63 }
 0x155   :  { %1408 = vmatprep.subr.bf16.mxu0 %v855_v42  ;;  %1278 = vst [vmem:[%s1777_s7 + $0x40] sm:$0xff] %v853_v0   ;;  %v845_v4 = vpack.c.bf16 %v814_v3, %v813_v1  ;;  %1045 = vmatprep.mubr.bf16.mxu0 %v1158_v2 }
 0x157   :  { %1195 = vst [vmem:[%s1777_s7] sm:$0xff] %v845_v4  }
 0x158   :  { %1409 = vmatpush3.bf16.msra.mxu0 %v847_v47 }
 0x159   :  { %1410 = vmatprep.subr.bf16.mxu0 %v854_v51 }
 0x15c   :  { %1411 = vmatpush3.bf16.msra.mxu0 %v846_v60 }
 0x15d   :  { %1412 = vmatprep.subr.bf16.mxu0 %v853_v0 }
 0x160   :  { %1413 = vmatpush3.bf16.msra.mxu0 %v845_v4 }
 0x163   :  { %1046 = vmatmul.mubr.bf16.vlgmr.msra.gmra.mxu0 %v1157_v19 }
 0x223   :  { %v1414_v5 = vpop.f32.mrf.mxu0 }
 0x225   :  { %v1415_v6 = vpop.f32.mrf.mxu0 }
 0x226   :  { %v1416_v7 = vadd.f32 %v1415_v6, %v1414_v5 }
 0x227   :  { %v1417_v8 = vpop.f32.mrf.mxu0 }
 0x228   :  { %1053 = vst [vmem:[%s1778_s8] sm:$0xff] %v1416_v7 }
 0x229   :  { %v1418_v9 = vpop.f32.mrf.mxu0 }

</bundles_post_ra>
